<compile_context>
chip_gen: v5e
topology: v5e:2x2
jax: 0.10.0
libtpu: 0.0.40
codegen_flags: <defaults>
</compile_context>

<pallas_src>
import math

import jax
import jax.numpy as jnp
from jax.experimental import pallas as pl
from jax.experimental.pallas import tpu as pltpu


def _round_up(x, m):
    return ((x + m - 1) // m) * m


# -----------------------------------------------------------------------------
# Pallas kernel: per-(p-tile, e-tile, batch)   out = x @ W + (pos + bias)
#   x_ref  : (tp, F)    patchified latents (batch squeezed, F unpadded)
#   w_ref  : (F, te)    projection weight slice (transposed vs torch layout)
#   pos_ref: (tp, te)   positional-embedding slice with bias folded in (f32)
#   o_ref  : (tp, te)
# -----------------------------------------------------------------------------
def _patch_embed_kernel(x_ref, w_ref, pos_ref, o_ref):
    acc = jnp.dot(x_ref[...], w_ref[...], preferred_element_type=jnp.float32)
    o_ref[...] = (acc + pos_ref[...].astype(jnp.float32)).astype(o_ref.dtype)


def aura_flow_patch_embed(latent, proj_weight, proj_bias, pos_embed,
                          patch_size, pos_embed_max_size,
                          compute_dtype=jnp.bfloat16,
                          out_dtype=None,
                          vmem_budget_bytes=24 * 1024 * 1024):
    """Forward pass of AuraFlowPatchEmbed.

    latent:      (B, C, H, W)                 -- NCHW, same as PyTorch
    proj_weight: (E, F)                       -- torch nn.Linear layout (out, in)
    proj_bias:   (E,)
    pos_embed:   (1, pos_embed_max_size, E)
    compute_dtype: dtype for the x / W streams (None -> keep input dtype).
                   Accumulation is always f32; pos+bias is added in f32.
    returns:     (B, num_patches, E) in out_dtype (default: latent.dtype)
    """
    B, C, H, W = latent.shape
    p = patch_size
    h_p, w_p = H // p, W // p
    P = h_p * w_p
    F = p * p * C
    E = proj_weight.shape[0]
    out_dtype = jnp.dtype(out_dtype if out_dtype is not None else latent.dtype)

    # --- patchify (XLA glue; matches torch view/permute/flatten exactly) ----
    x = latent.reshape(B, C, h_p, p, w_p, p)
    x = jnp.transpose(x, (0, 2, 4, 1, 3, 5)).reshape(B, P, F)

    # --- positional embedding: contiguous static slice (not a gather) -------
    h_max = int(math.isqrt(pos_embed_max_size))
    w_max = h_max
    starth = h_max // 2 - h_p // 2
    startw = w_max // 2 - w_p // 2
    pos_flat = pos_embed.reshape(pos_embed_max_size, E)
    pos_grid = pos_flat[: h_max * w_max].reshape(h_max, w_max, E)
    pos_sel = pos_grid[starth:starth + h_p, startw:startw + w_p, :]
    pos_sel = pos_sel.reshape(P, E).astype(jnp.float32)
    # Fold the linear bias into pos in f32 (no precision loss: pos stays f32).
    pos_sel = pos_sel + proj_bias.astype(jnp.float32)[None, :]

    w_t = proj_weight.T                                   # (F, E)

    # --- lane-dense output padding (E only; contraction F stays unpadded) ---
    Ep = max(128, _round_up(E, 128))
    if Ep != E:
        w_t = jnp.pad(w_t, ((0, 0), (0, Ep - E)))
        pos_sel = jnp.pad(pos_sel, ((0, 0), (0, Ep - E)))

    if compute_dtype is not None:
        x = x.astype(compute_dtype)
        w_t = w_t.astype(compute_dtype)

    x_item = jnp.dtype(x.dtype).itemsize
    w_item = jnp.dtype(w_t.dtype).itemsize
    pos_item = jnp.dtype(pos_sel.dtype).itemsize
    out_item = out_dtype.itemsize

    def _dbuf_bytes(tp_c, te_c):
        # double-buffered per-stream footprint of the auto-pipeline
        x_b = tp_c * F * x_item
        w_b = F * te_c * w_item
        pos_b = tp_c * te_c * pos_item
        out_b = tp_c * te_c * out_item
        return 2 * (x_b + w_b + pos_b + out_b)

    # --- tile selection: prefer a single E tile, biggest tp that fits -------
    n128 = Ep // 128
    te_candidates = sorted({d * 128 for d in range(1, n128 + 1) if n128 % d == 0},
                           reverse=True)
    p_cap = min(512, _round_up(P, 8))
    tp_candidates = sorted({512, 384, 256, 128, 64, 32, 16, 8, p_cap},
                           reverse=True)
    tp, te = 8, 128
    found = False
    for te_c in te_candidates:
        for tp_c in tp_candidates:
            if tp_c > p_cap:
                continue
            if _dbuf_bytes(tp_c, te_c) <= vmem_budget_bytes:
                tp, te = tp_c, te_c
                found = True
                break
        if found:
            break

    # --- pad P up to a multiple of tp (instead of tp = full, awkward P) -----
    Pp = _round_up(P, tp)
    if Pp != P:
        x = jnp.pad(x, ((0, 0), (0, Pp - P), (0, 0)))
        pos_sel = jnp.pad(pos_sel, ((0, Pp - P), (0, 0)))

    n_p = Pp // tp
    n_e = Ep // te

    # vmem limit: double-buffered streams + f32 accumulator tile + headroom,
    # clamped so it stays inside every generation's physical VMEM.
    vmem_limit = _dbuf_bytes(tp, te) + tp * te * 4 + (8 << 20)
    vmem_limit = int(min(max(vmem_limit, 32 << 20), 56 << 20))

    out_padded = pl.pallas_call(
        _patch_embed_kernel,
        out_shape=jax.ShapeDtypeStruct((B, Pp, Ep), out_dtype),
        grid_spec=pltpu.PrefetchScalarGridSpec(
            num_scalar_prefetch=0,
            # (p-tiles, e-tiles, batch): batch innermost so the W block
            # (depends only on ei) and pos block (pi, ei) are not re-DMA'd
            # across consecutive steps; n_p leads for megacore balance.
            grid=(n_p, n_e, B),
            in_specs=[
                pl.BlockSpec((pl.Squeezed(), tp, F),
                             lambda pi, ei, b: (b, pi, 0)),
                pl.BlockSpec((F, te), lambda pi, ei, b: (0, ei)),
                pl.BlockSpec((tp, te), lambda pi, ei, b: (pi, ei)),
            ],
            out_specs=pl.BlockSpec((pl.Squeezed(), tp, te),
                                   lambda pi, ei, b: (b, pi, ei)),
        ),
        compiler_params=pltpu.CompilerParams(
            dimension_semantics=("parallel", "parallel", "parallel"),
            vmem_limit_bytes=vmem_limit),
    )(x, w_t, pos_sel)

    if Pp != P:
        out_padded = out_padded[:, :P, :]
    if Ep != E:
        out_padded = out_padded[..., :E]
    return out_padded


# -----------------------------------------------------------------------------
# Pure-JAX reference (mirrors the PyTorch forward exactly, incl. the gather).
# -----------------------------------------------------------------------------
def _reference(latent, proj_weight, proj_bias, pos_embed,
               patch_size, pos_embed_max_size):
    B, C, H, W = latent.shape
    p = patch_size
    h_p, w_p = H // p, W // p
    x = latent.reshape(B, C, h_p, p, w_p, p)
    x = jnp.transpose(x, (0, 2, 4, 1, 3, 5)).reshape(B, h_p * w_p, p * p * C)
    y = jnp.einsum("bpf,ef->bpe", x, proj_weight) + proj_bias

    h_max = int(math.isqrt(pos_embed_max_size))
    w_max = h_max
    starth = h_max // 2 - h_p // 2
    startw = w_max // 2 - w_p // 2
    rows = jnp.arange(starth, starth + h_p)
    cols = jnp.arange(startw, startw + w_p)
    row_idx, col_idx = jnp.meshgrid(rows, cols, indexing="ij")
    pe_index = (row_idx * w_max + col_idx).reshape(-1)
    return y + pos_embed[:, pe_index]


if __name__ == "__main__":
    key = jax.random.PRNGKey(0)

    # --- case 1: small shapes consistent with the module's forward ----------
    B, C, H, W = 2, 4, 16, 16
    patch_size = 4
    embed_dim = 32
    pos_embed_max_size = 36          # 6x6 grid of positional embeddings

    k_lat, k_w, k_b, k_pe = jax.random.split(key, 4)
    in_features = patch_size * patch_size * C
    latent = jax.random.normal(k_lat, (B, C, H, W), dtype=jnp.float32)
    proj_weight = jax.random.normal(k_w, (embed_dim, in_features),
                                    dtype=jnp.float32) * 0.02
    proj_bias = jax.random.normal(k_b, (embed_dim,), dtype=jnp.float32) * 0.02
    pos_embed = jax.random.normal(
        k_pe, (1, pos_embed_max_size, embed_dim), dtype=jnp.float32) * 0.1

    ref = _reference(latent, proj_weight, proj_bias, pos_embed,
                     patch_size, pos_embed_max_size)

    # f32 streams: tight tolerance vs the f32 reference.
    out_f32 = aura_flow_patch_embed(latent, proj_weight, proj_bias, pos_embed,
                                    patch_size, pos_embed_max_size,
                                    compute_dtype=None)
    out_f32 = jax.block_until_ready(out_f32)
    assert out_f32.shape == (B, (H // patch_size) * (W // patch_size), embed_dim)
    assert jnp.allclose(out_f32, ref, atol=2e-5, rtol=2e-5), \
        "f32 kernel mismatch vs reference"

    # default bf16 streams (f32 accumulation / f32 pos+bias add): loose tol.
    out_bf16 = aura_flow_patch_embed(latent, proj_weight, proj_bias, pos_embed,
                                     patch_size, pos_embed_max_size)
    out_bf16 = jax.block_until_ready(out_bf16)
    assert jnp.allclose(out_bf16, ref, atol=3e-2, rtol=3e-2), \
        "bf16 kernel mismatch vs reference"

    # --- case 2: awkward P (exercises the P-padding path) -------------------
    H2 = W2 = 12                     # -> 3x3 = 9 patches (not a multiple of 8)
    latent2 = jax.random.normal(jax.random.PRNGKey(1), (B, C, H2, W2),
                                dtype=jnp.float32)
    ref2 = _reference(latent2, proj_weight, proj_bias, pos_embed,
                      patch_size, pos_embed_max_size)
    out2 = aura_flow_patch_embed(latent2, proj_weight, proj_bias, pos_embed,
                                 patch_size, pos_embed_max_size,
                                 compute_dtype=None)
    out2 = jax.block_until_ready(out2)
    assert out2.shape == (B, 9, embed_dim)
    assert jnp.allclose(out2, ref2, atol=2e-5, rtol=2e-5), \
        "padded-P kernel mismatch vs reference"

    print("KERNEL_OK")
</pallas_src>

<mosaic_0001>
module attributes {stable_mosaic.version = 11 : i64} {
  func.func @_patch_embed_kernel(%arg0: i32, %arg1: i32, %arg2: i32, %arg3: memref<1x16x64xf32, #tpu.memory_space<vmem>>, %arg4: memref<64x128xf32, #tpu.memory_space<vmem>>, %arg5: memref<16x128xf32, #tpu.memory_space<vmem>>, %arg6: memref<1x16x128xf32, #tpu.memory_space<vmem>>) attributes {dimension_semantics = [#tpu.dimension_semantics<parallel>, #tpu.dimension_semantics<parallel>, #tpu.dimension_semantics<parallel>], iteration_bounds = array<i64: 1, 1, 2>, scalar_prefetch = 0 : i64, scratch_operands = 0 : i64, tpu.core_type = #tpu.core_type<tc>, window_params = [{transform_indices = @transform_0, window_bounds = array<i64: 1, 16, 64>}, {transform_indices = @transform_1, window_bounds = array<i64: 64, 128>}, {transform_indices = @transform_2, window_bounds = array<i64: 16, 128>}, {transform_indices = @transform_3, window_bounds = array<i64: 1, 16, 128>}]} {
    %c0 = arith.constant 0 : index
    %c0_0 = arith.constant 0 : index
    %c0_1 = arith.constant 0 : index
    %0 = vector.load %arg3[%c0, %c0_0, %c0_1] : memref<1x16x64xf32, #tpu.memory_space<vmem>>, vector<1x16x64xf32>
    %1 = vector.shape_cast %0 : vector<1x16x64xf32> to vector<16x64xf32>
    %c0_2 = arith.constant 0 : index
    %c0_3 = arith.constant 0 : index
    %2 = vector.load %arg4[%c0_2, %c0_3] : memref<64x128xf32, #tpu.memory_space<vmem>>, vector<64x128xf32>
    %cst = arith.constant dense<0.000000e+00> : vector<16x128xf32>
    %3 = tpu.matmul %1, %2, %cst {dimension_numbers = #tpu.dot_dimension_numbers<[1], [0], [0], [1], [0, 0, 1, 1], [], []>} : vector<16x64xf32>, vector<64x128xf32>, vector<16x128xf32> -> vector<16x128xf32>
    %c0_4 = arith.constant 0 : index
    %c0_5 = arith.constant 0 : index
    %4 = vector.load %arg5[%c0_4, %c0_5] : memref<16x128xf32, #tpu.memory_space<vmem>>, vector<16x128xf32>
    %5 = arith.addf %3, %4 : vector<16x128xf32>
    %c0_6 = arith.constant 0 : index
    %c0_7 = arith.constant 0 : index
    %c0_8 = arith.constant 0 : index
    %6 = vector.load %arg6[%c0_6, %c0_7, %c0_8] : memref<1x16x128xf32, #tpu.memory_space<vmem>>, vector<1x16x128xf32>
    %7 = vector.shape_cast %6 : vector<1x16x128xf32> to vector<16x128xf32>
    %8 = vector.shape_cast %5 : vector<16x128xf32> to vector<1x16x128xf32>
    tpu.vector_store %arg6[%c0_6, %c0_7, %c0_8], %8 {strides = array<i32>} : memref<1x16x128xf32, #tpu.memory_space<vmem>>, vector<1x16x128xf32>,
    return
  }
  func.func @transform_0(%arg0: i32, %arg1: i32, %arg2: i32) -> (i32, i32, i32) {
    %c0_i32 = arith.constant 0 : i32
    %c0_i32_0 = arith.constant 0 : i32
    return %arg2, %arg0, %c0_i32 : i32, i32, i32
  }
  func.func @transform_1(%arg0: i32, %arg1: i32, %arg2: i32) -> (i32, i32) {
    %c0_i32 = arith.constant 0 : i32
    %c0_i32_0 = arith.constant 0 : i32
    return %c0_i32, %arg1 : i32, i32
  }
  func.func @transform_2(%arg0: i32, %arg1: i32, %arg2: i32) -> (i32, i32) {
    %c0_i32 = arith.constant 0 : i32
    return %arg0, %arg1 : i32, i32
  }
  func.func @transform_3(%arg0: i32, %arg1: i32, %arg2: i32) -> (i32, i32, i32) {
    %c0_i32 = arith.constant 0 : i32
    return %arg2, %arg0, %arg1 : i32, i32, i32
  }
}

</mosaic_0001>

<bundles_post_ra>
// kernel: tpu_custom_call.1
= control target key start
LH: loop header
LB: loop body
LE: loop exit
PB: predicated region body
PF: predicated region fallthrough
CT: control target
= control target key end

     0   :  { %8 = vsyncpa [#allocation3], 0  ;;  %s932_s0 = inlined_call_operand.hbm [shape: f32[2,16,64], index: 0, kind: input, shape index: {}]   ;;  %s933_s1 = inlined_call_operand.hbm [shape: f32[64,128], index: 1, kind: input, shape index: {}]   ;;  %s934_s2 = inlined_call_operand.hbm [shape: f32[16,128], index: 2, kind: input, shape index: {}]   ;;  %s935_s3 = inlined_call_operand.hbm [shape: f32[2,16,128], index: 3, kind: output, shape index: {}]  }
   0x1   :  { %10 = vsyncpa [#allocation3 + $0x1], 0 }
   0x2   :  { %11 = vsyncpa [#allocation6], 0 }
   0x3   :  { %12 = vsyncpa [#allocation4], 0 }
   0x4   :  { %14 = vsyncpa [#allocation4 + $0x1], 0  ;;  %s773_s12 = smov 0   ;;  %s775_s13 = smov 0  }
   0x5   :  { %s777_s14 = smov 0   ;;  %s779_s15 = smov 0  }
   0x6   :  { %s781_s16 = smov 0   ;;  %s783_s17 = smov 0  }
   0x7 LB: > { %s451_s18 = sadd.s32 4294967295, %s745_s17   ;;  %s452_s19 = sadd.s32 4294967294, %s745_s17   ;;  %s745_s17 = sphi %s783_s17, %s20_s17   ;;  %s741_s16 = sphi %s781_s16, %s945_s16   ;;  %s737_s15 = sphi %s779_s15, %s944_s15   ;;  %s733_s14 = sphi %s777_s14, %s943_s14   ;;  %s729_s13 = sphi %s775_s13, %s942_s13   ;;  %s725_s12 = sphi %s773_s12, %s941_s12  }
   0x8   : > { %p61_p0 = scmp.ne.s32.totalorder %s729_s13, %s725_s12  ;;  %p809_p1 = scmp.eq.s32.totalorder %s451_s18, 0 }
   0x9   : > { %p149_p2 = scmp.eq.s32.totalorder %s452_s19, 1  ;;  %p453_p4 = scmp.ge.s32.totalorder %s745_s17, 1 }
   0xa   : > { %p815_p3 = por %p809_p1, %p61_p0  ;;  %p156_p6 = scmp.lt.s32.totalorder %s745_s17, 3 }
   0xb   : > { %p820_p5 = por %p149_p2, %p61_p0  ;;  %s169_s25 = sshll.u32 %s933_s1, 4  ;;  %s170_s25 = int_to_ptr.hbm [resolvable:$true] %s169_s25 }
   0xc   : > { %p828_p7 = pnand %p453_p4, %p156_p6  ;;  %s747_s27 = smov [#allocation5]  }
   0xd   : > { %s171_s28 = sshll.u32 %s747_s27, 4  ;;  %p456_p10 = scmp.ge.s32.totalorder %s745_s17, 2  ;;  %s172_s28 = int_to_ptr.vmem [resolvable:$true] %s171_s28 }
   0xe   : > { %p494_p8 = pneg %p828_p7  ;;  %s187_s4 = sshll.u32 %s934_s2, 4  ;;  %s188_s4 = int_to_ptr.hbm [resolvable:$true] %s187_s4 }
   0xf   : > { %s748_s5 = smov 128   ;;  %s749_s6 = smov 8  }
  0x10   : > { %p495_p9 = pnand %p494_p8, %p809_p1  ;;  %s750_s7 = smov [#allocation7]  }
  0x11   : > { %s189_s8 = sshll.u32 %s750_s7, 4  ;;  %p143_p11 = scmp.eq.s32.totalorder %s451_s18, 1  ;;  %s190_s8 = int_to_ptr.vmem [resolvable:$true] %s189_s8 }
  0x12   : > { %497 = dma.hbm_to_vmem [thread:$0]  (!%p495_p9), %s170_s25, 1024, %s172_s28, [#allocation6], %s748_s5, %s748_s5, %s749_s6  }
  0x13   : > { %500 = dma.hbm_to_vmem [thread:$0]  (!%p495_p9), %s188_s4, 256, %s190_s8, [#allocation6], %s748_s5, %s748_s5, %s749_s6  }
  0x14   : > { %s32_s9 = sadd.s32 1, %s741_s16  ;;  %s48_s10 = sadd.s32 1, %s733_s14 }
  0x15   : > { %p33_p12 = scmp.ge.s32.totalorder %s32_s9, 2  ;;  %p55_p13 = scmp.ne.s32.totalorder %s733_s14, %s729_s13 }
  0x16   : > { %p56_p0 = scmp.eq.s32.totalorder %s745_s17, 0  ;;  %p511_p4 = scmp.lt.s32.totalorder %s745_s17, 2 }
  0x17   : > { %s947_s9 = smov (%p33_p12, %s32_s9), 0  ;;  %p855_p2 = por %p143_p11, %p55_p13 }
  0x18   : > { %s43_s19 = ssub.s32 %s741_s16, %s947_s9  ;;  %s203_s23 = sand.u32 1, %s733_s14  }
  0x19   : > { %p46_p6 = scmp.eq.s32.totalorder %s43_s19, 0  ;;  %p57_p8 = por %p56_p0, %p55_p13 }
  0x1a   : > { %s457_s24 = sshll.u32 %s203_s23, 4  ;;  %s472_s18 = sshll.u32 %s741_s16, 4 }
  0x1b   : > { %s865_s25 = scalar_select %p46_p6, %s733_s14, %s48_s10  }
  0x1c   : > { %s214_s29 = scalar_lea.hbm %s932_s0, %s472_s18  ;;  %s207_s4 = scalar_lea.vmem [#allocation2], %s457_s24 }
  0x1d   : > { %s215_s30 = sshll.u32 %s214_s29, 4  ;;  %s217_s7 = sshll.u32 %s207_s4, 4  ;;  %s216_s30 = int_to_ptr.hbm [resolvable:$true] %s215_s30  ;;  %s218_s7 = int_to_ptr.vmem [resolvable:$true] %s217_s7 }
  0x1e   : > { %p502_p9 = pnand %p511_p4, %p57_p8  ;;  %s204_s8 = scalar_lea.sflag [#allocation3], %s203_s23 }
  0x1f   : > { %229 = sbr.rel (%p828_p7) target bundleno = 188 (0xbc), region = 32  ;;  %s878_s10 = sand.u32 (!%p828_p7), 1, %s729_s13  }
  0x20   : > { %504 = dma.hbm_to_vmem [thread:$0]  (!%p502_p9), %s216_s30, 256, %s218_s7, %s204_s8, %s748_s5, %s748_s5, %s749_s6  }
  0x21   : > { %s461_s19 = sshll.u32 (!%p828_p7), %s878_s10, 4  ;;  %s232_s24 = scalar_lea.sflag (!%p828_p7), [#allocation3], %s878_s10 }
  0x22   : > { %s235_s18 = scalar_lea.vmem (!%p828_p7), [#allocation2], %s461_s19 }
  0x24   : > { %712 = dma.done.wait (%p815_p3), %s232_s24, 256  }
  0x25   : > { %714 = vsyncadd (%p815_p3), %s232_s24, 4294967040 }
  0x26   : > { %716 = dma.done.wait (%p809_p1), [#allocation6], 1280  }
  0x27   : > { %718 = vsyncadd (%p809_p1), [#allocation6], 4294966016  ;;  %v281_v0 = vld [vmem:[#allocation5 + $0x38] sm:$0xff]  ;;  %v280_v1 = vld [vmem:[#allocation5 + $0x30] sm:$0xff]  ;;  %vm284_vm0 = vcmask 523264   ;;  %s473_s20 = sshll.u32 %s737_s15, 4 }
  0x28   : > { %299 = vmatpush.msra.mxu0 %v281_v0  ;;  %474 = vmatpush.msra.mxu1 %v281_v0  ;;  %v279_v2 = vld [vmem:[#allocation5 + $0x28] sm:$0xff]  ;;  %v278_v3 = vld [vmem:[#allocation5 + $0x20] sm:$0xff]  ;;  %v277_v4 = vld [vmem:[#allocation5 + $0x18] sm:$0xff]  ;;  %s331_s5 = scalar_lea.hbm %s935_s3, %s473_s20  ;;  %s268_s6 = scalar_lea.vmem [#allocation8], %s461_s19 }
  0x29   : > { %v276_v5 = vld [vmem:[#allocation5 + $0x10] sm:$0xff]  ;;  %v275_v6 = vld [vmem:[#allocation5 + $0x8] sm:$0xff]  ;;  %v274_v7 = vld [vmem:[#allocation5] sm:$0xff]  ;;  %s332_s23 = sshll.u32 %s268_s6, 4  ;;  %s334_s27 = sshll.u32 %s331_s5, 4  ;;  %s333_s23 = int_to_ptr.vmem [resolvable:$true] %s332_s23  ;;  %s335_s27 = int_to_ptr.hbm [resolvable:$true] %s334_s27 }
  0x2a   : > { %300 = vmatpush.msra.mxu0 %v280_v1  ;;  %475 = vmatpush.msra.mxu1 %v280_v1  ;;  %v272_v8 = vld [vmem:[%s235_s18] sm:$0xff]  ;;  %v273_v9 = vld [vmem:[%s235_s18 + $0x8] sm:$0xff]  ;;  %s317_s15 = scalar_lea.sflag [#allocation4], %s878_s10  ;;  %s673_s28 = sshra.s32 %s335_s27, 4  ;;  %s674_s28 = int_to_ptr.hbm [resolvable:$true] %s673_s28 }
  0x2b   : > { %v282_v10 = vld [vmem:[#allocation7] sm:$0xff]  ;;  %v283_v11 = vld [vmem:[#allocation7 + $0x8] sm:$0xff]  ;;  %s675_s29 = scalar_lea.hbm %s674_s28, 16  ;;  %s679_s7 = scalar_lea.hbm %s935_s3, 32 }
  0x2c   : > { %301 = vmatpush.msra.mxu0 %v279_v2  ;;  %476 = vmatpush.msra.mxu1 %v279_v2  ;;  %p676_p1 = scmp.ne.s32.totalorder %s674_s28, %s675_s29  ;;  %p680_p11 = scmp.lt.s32.totalorder %s674_s28, %s935_s3 }
  0x2d   : > { %p681_p12 = scmp.lt.s32.totalorder %s679_s7, %s675_s29 }
  0x2e   : > { %302 = vmatpush.msra.mxu0 %v278_v3  ;;  %477 = vmatpush.msra.mxu1 %v278_v3  ;;  %p677_p3 = pnand %p676_p1, %p855_p2 }
  0x2f   : > { %p682_p13 = por %p681_p12, %p680_p11 }
  0x30   : > { %303 = vmatpush.msra.mxu0 %v277_v4  ;;  %478 = vmatpush.msra.mxu1 %v277_v4  ;;  %p678_p7 = pneg %p677_p3 }
  0x32   : > { %304 = vmatpush.msra.mxu0 %v276_v5  ;;  %479 = vmatpush.msra.mxu1 %v276_v5  ;;  %p683_p0 = pnand %p682_p13, %p678_p7 }
  0x34   : > { %305 = vmatpush.msra.mxu0 %v275_v6  ;;  %480 = vmatpush.msra.mxu1 %v275_v6 }
  0x36   : > { %306 = vmatpush.msra.mxu0 %v274_v7  ;;  %481 = vmatpush.msra.mxu1 %v274_v7 }
  0x37   : > { %465 = vmatmul.msk.f32.vlgmr.msra.gmra.mxu0 %vm284_vm0, %v272_v8  ;;  %466 = vmatmul.msk.f32.vlgmr.msra.gmra.mxu1 %vm284_vm0, %v273_v9 }
  0xb4   : > { %v308_v12 = vpop.f32.mrf.mxu0  ;;  %v311_v13 = vpop.f32.mrf.mxu1 }
  0xb5   : > { %v309_v14 = vadd.f32 %v308_v12, %v282_v10  ;;  %v312_v15 = vadd.f32 %v311_v13, %v283_v11 }
  0xb7   : > { %314 = vst [vmem:[%s268_s6] sm:$0xff] %v309_v14 }
  0xb8   : > { %315 = vst [vmem:[%s268_s6 + $0x8] sm:$0xff] %v312_v15 }
  0xb9   : > { %686 = shalt.err (!%p683_p0)
}
  0xba   : > { %s751_s10 = smov 128   ;;  %s752_s24 = smov 8  }
  0xbb   : > { %492 = dma.vmem_to_hbm [thread:$0]  (%p855_p2), %s333_s23, 256, %s335_s27, %s317_s15, %s751_s10, %s751_s10, %s752_s24  }
  0xbc PF: > { %s349_s18 = sand.u32 1, %s725_s12   ;;  %p506_p4 = pnand %p456_p10, %p820_p5 }
  0xbd   : > { %s350_s20 = scalar_lea.sflag [#allocation4], %s349_s18 }
  0xbe   : > { %p507_p6 = pneg %p506_p4 }
  0xc0   : > { %720 = dma.done.wait (%p507_p6), %s350_s20, 256  }
  0xc1   : > { %722 = vsyncadd (%p507_p6), %s350_s20, 4294967040  ;;  %s20_s17 = sadd.s32 1, %s745_s17   ;;  %s941_s12 = smov %s729_s13 }
  0xc2   : > { %p17_p8 = scmp.ge.s32.totalorder %s20_s17, 4   ;;  %s942_s13 = smov %s733_s14 }
  0xc3   : > { %s943_s14 = smov %s865_s25  ;;  %s944_s15 = smov %s741_s16 }
  0xc4   : > { %s945_s16 = smov %s947_s9  ;;  %19 = sbr.rel (!%p17_p8) target bundleno = 7 (0x7), region = 87 }
  0xc9   :  { %356 = vsyncpa [#allocation3], 1 }
  0xca   :  { %358 = vsyncpa [#allocation3 + $0x1], 1 }
  0xcb   :  { %359 = vsyncpa [#allocation6], 1 }
  0xcc   :  { %360 = vsyncpa [#allocation4], 1 }
  0xcd   :  { %362 = vsyncpa [#allocation4 + $0x1], 1 }

</bundles_post_ra>
